<compile_context>
chip_gen: v5e
topology: v5e:2x2
jax: 0.10.0
libtpu: 0.0.40
codegen_flags: <defaults>
</compile_context>

<pallas_src>
import jax
import jax.numpy as jnp
from jax import lax
from jax.experimental import pallas as pl
from jax.experimental.pallas import tpu as pltpu

_SQRT_2_OVER_PI = 0.7978845608028654


def _gelu_tanh(x):
    return 0.5 * x * (1.0 + jnp.tanh(_SQRT_2_OVER_PI * (x + 0.044715 * x * x * x)))


# --------------------------------------------------------------------------------------
# Fused encoder-block kernel: one grid step = (BB*N, D) rows (BB batch elements' tokens).
# --------------------------------------------------------------------------------------
def _make_block_kernel(BB, N, D, H, HD, eps):
    M = BB * N

    def kernel(x_ref, g1_ref, b1_ref, wqkv_ref, bqkv_ref, wo_ref, bo_ref,
               g2_ref, b2_ref, w1_ref, b1m_ref, w2_ref, b2m_ref, out_ref):
        x = x_ref[...]                                                 # (M, D) f32

        # ---- LayerNorm 1 (f32 VPU) --------------------------------------------------
        mu = jnp.mean(x, axis=-1, keepdims=True)
        xc = x - mu
        var = jnp.mean(xc * xc, axis=-1, keepdims=True)
        xn = xc * lax.rsqrt(var + eps) * g1_ref[...] + b1_ref[...]     # (M, D)

        # ---- fused QKV projection: one (D, 3D) bf16 MXU matmul, f32 accumulation ----
        # (1/sqrt(HD) is already folded into the Q columns of wqkv/bqkv.)
        qkv = jnp.dot(xn.astype(jnp.bfloat16), wqkv_ref[...],
                      preferred_element_type=jnp.float32) + bqkv_ref[...]   # (M, 3D)
        q = qkv[:, 0:D]
        k = qkv[:, D:2 * D]
        v = qkv[:, 2 * D:3 * D]

        # ---- head-batched scaled dot-product attention -------------------------------
        def to_heads(t):                                               # (M, D)->(BB*H, N, HD)
            return (t.reshape(BB, N, H, HD)
                     .transpose(0, 2, 1, 3)
                     .reshape(BB * H, N, HD))

        qh = to_heads(q).astype(jnp.bfloat16)
        kh = to_heads(k).astype(jnp.bfloat16)
        vh = to_heads(v).astype(jnp.bfloat16)

        s = jnp.einsum('gqd,gkd->gqk', qh, kh,
                       preferred_element_type=jnp.float32)             # (BB*H, N, N)
        s = s - jnp.max(s, axis=-1, keepdims=True)
        p = jnp.exp(s)                                                  # f32 EUP
        p = p * pl.reciprocal(jnp.sum(p, axis=-1, keepdims=True), approx=True)
        ctx = jnp.einsum('gqk,gkd->gqd', p.astype(jnp.bfloat16), vh,
                         preferred_element_type=jnp.float32)            # (BB*H, N, HD)
        ctx = (ctx.reshape(BB, H, N, HD)
                  .transpose(0, 2, 1, 3)
                  .reshape(M, D))                                       # (M, D)

        # ---- output projection + residual (MAD / dropout = identity at inference) ---
        ao = jnp.dot(ctx.astype(jnp.bfloat16), wo_ref[...],
                     preferred_element_type=jnp.float32) + bo_ref[...]
        x1 = x + ao

        # ---- LayerNorm 2 ------------------------------------------------------------
        mu2 = jnp.mean(x1, axis=-1, keepdims=True)
        xc2 = x1 - mu2
        var2 = jnp.mean(xc2 * xc2, axis=-1, keepdims=True)
        x2 = xc2 * lax.rsqrt(var2 + eps) * g2_ref[...] + b2_ref[...]

        # ---- MLP: Linear -> GELU -> Linear (hidden width 4*D is lane-dense) ---------
        hid = jnp.dot(x2.astype(jnp.bfloat16), w1_ref[...],
                      preferred_element_type=jnp.float32) + b1m_ref[...]
        hid = _gelu_tanh(hid)                                           # f32
        mlp = jnp.dot(hid.astype(jnp.bfloat16), w2_ref[...],
                      preferred_element_type=jnp.float32) + b2m_ref[...]

        out_ref[...] = x1 + mlp

    return kernel


# --------------------------------------------------------------------------------------
# Wrapper: 2-wide "parallel" grid (both v7x TensorCores), batch folded into matmul M dim.
# --------------------------------------------------------------------------------------
def transformer_encoder_block(x, p, num_heads, eps=1e-5):
    B, N, D = x.shape
    H = num_heads
    assert D % H == 0
    HD = D // H
    F = p["w1"].shape[-1]

    G = 2 if (B >= 2 and B % 2 == 0) else 1     # 2 grid steps -> megacore on v7x
    BB = B // G
    M = BB * N

    x2d = x.reshape(B * N, D)                    # lane-width D row slab (layout plumbing)

    def full(shape):
        zeros = (0,) * len(shape)
        return pl.BlockSpec(shape, lambda g: zeros)

    out2d = pl.pallas_call(
        _make_block_kernel(BB, N, D, H, HD, eps),
        out_shape=jax.ShapeDtypeStruct((B * N, D), jnp.float32),
        grid=(G,),
        in_specs=[
            pl.BlockSpec((M, D), lambda g: (g, 0)),     # x rows
            full((1, D)), full((1, D)),                 # LN1 gamma / beta        (f32)
            full((D, 3 * D)), full((1, 3 * D)),         # fused QKV weight (bf16) / bias (f32)
            full((D, D)), full((1, D)),                 # out-proj weight (bf16)  / bias (f32)
            full((1, D)), full((1, D)),                 # LN2 gamma / beta        (f32)
            full((D, F)), full((1, F)),                 # MLP fc1 weight (bf16)   / bias (f32)
            full((F, D)), full((1, D)),                 # MLP fc2 weight (bf16)   / bias (f32)
        ],
        out_specs=pl.BlockSpec((M, D), lambda g: (g, 0)),
        compiler_params=pltpu.CompilerParams(dimension_semantics=("parallel",)),
    )(x2d, p["ln1_g"], p["ln1_b"], p["wqkv"], p["bqkv"], p["wo"], p["bo"],
      p["ln2_g"], p["ln2_b"], p["w1"], p["b1"], p["w2"], p["b2"])

    return out2d.reshape(B, N, D)


# --------------------------------------------------------------------------------------
# Parameter prep (one-time, outside the per-call path): fold 1/sqrt(HD) into the Q columns
# of the fused QKV projection, cast MXU weights to bf16 (biases / LN params stay f32).
# --------------------------------------------------------------------------------------
def prepare_params(p, num_heads):
    D = p["wo"].shape[0]
    HD = D // num_heads
    scale = 1.0 / float(HD) ** 0.5
    wqkv = p["wqkv"].at[:, :D].multiply(scale)
    bqkv = p["bqkv"].at[:, :D].multiply(scale)
    return dict(
        ln1_g=p["ln1_g"], ln1_b=p["ln1_b"],
        wqkv=wqkv.astype(jnp.bfloat16), bqkv=bqkv,
        wo=p["wo"].astype(jnp.bfloat16), bo=p["bo"],
        ln2_g=p["ln2_g"], ln2_b=p["ln2_b"],
        w1=p["w1"].astype(jnp.bfloat16), b1=p["b1"],
        w2=p["w2"].astype(jnp.bfloat16), b2=p["b2"],
    )


# --------------------------------------------------------------------------------------
# Deterministic synthetic parameters (weights stored in "x @ W" orientation, f32)
# --------------------------------------------------------------------------------------
def init_params(key, dim, mlp_ratio=4):
    F = int(dim * mlp_ratio)
    ks = jax.random.split(key, 12)

    def nrm(k, shape, s=0.1):
        return s * jax.random.normal(k, shape, jnp.float32)

    return dict(
        ln1_g=1.0 + nrm(ks[0], (1, dim), 0.05),
        ln1_b=nrm(ks[1], (1, dim), 0.05),
        wqkv=nrm(ks[2], (dim, 3 * dim)),
        bqkv=nrm(ks[3], (1, 3 * dim), 0.02),
        wo=nrm(ks[4], (dim, dim)),
        bo=nrm(ks[5], (1, dim), 0.02),
        ln2_g=1.0 + nrm(ks[6], (1, dim), 0.05),
        ln2_b=nrm(ks[7], (1, dim), 0.05),
        w1=nrm(ks[8], (dim, F)),
        b1=nrm(ks[9], (1, F), 0.02),
        w2=nrm(ks[10], (F, dim)),
        b2=nrm(ks[11], (1, dim), 0.02),
    )


# --------------------------------------------------------------------------------------
# Pure-JAX f32 reference (same inference semantics, full-precision matmuls)
# --------------------------------------------------------------------------------------
def ref_forward(x, p, num_heads, eps=1e-5):
    prec = lax.Precision.HIGHEST
    B, N, D = x.shape
    H = num_heads
    HD = D // H

    def ln(y, g, b):
        mu = jnp.mean(y, -1, keepdims=True)
        var = jnp.mean((y - mu) ** 2, -1, keepdims=True)
        return (y - mu) * lax.rsqrt(var + eps) * g + b

    def mm(a, w):
        return jnp.einsum("...d,dk->...k", a, w, precision=prec)

    xn = ln(x, p["ln1_g"][0], p["ln1_b"][0])
    qkv = mm(xn, p["wqkv"]) + p["bqkv"][0]
    q, k, v = qkv[..., :D], qkv[..., D:2 * D], qkv[..., 2 * D:]
    qh = q.reshape(B, N, H, HD).transpose(0, 2, 1, 3)
    kh = k.reshape(B, N, H, HD).transpose(0, 2, 1, 3)
    vh = v.reshape(B, N, H, HD).transpose(0, 2, 1, 3)
    s = jnp.einsum("bhnd,bhmd->bhnm", qh, kh, precision=prec) / jnp.sqrt(float(HD))
    pattn = jax.nn.softmax(s, axis=-1)
    ctx = jnp.einsum("bhnm,bhmd->bhnd", pattn, vh,
                     precision=prec).transpose(0, 2, 1, 3).reshape(B, N, D)
    ao = mm(ctx, p["wo"]) + p["bo"][0]
    x1 = x + ao
    x2 = ln(x1, p["ln2_g"][0], p["ln2_b"][0])
    hid = _gelu_tanh(mm(x2, p["w1"]) + p["b1"][0])
    mlp = mm(hid, p["w2"]) + p["b2"][0]
    return x1 + mlp


if __name__ == "__main__":
    key = jax.random.PRNGKey(0)
    kx, kp = jax.random.split(key)

    B, N, D, H, mlp_ratio = 2, 8, 32, 4, 4
    x = jax.random.normal(kx, (B, N, D), jnp.float32)
    params = init_params(kp, D, mlp_ratio)
    prepped = prepare_params(params, num_heads=H)   # one-time: fold QK scale + bf16 weights

    out = transformer_encoder_block(x, prepped, num_heads=H)
    jax.block_until_ready(out)
    assert out.shape == (B, N, D)

    ref = ref_forward(x, params, num_heads=H)
    err = float(jnp.max(jnp.abs(out - ref)))
    # bf16-on-MXU with f32 accumulation vs a full-f32 reference: bf16-class tolerance.
    assert err < 5e-2, f"kernel/reference mismatch: {err}"

    print("KERNEL_OK")
</pallas_src>

<mosaic_0001>
module attributes {stable_mosaic.version = 11 : i64} {
  func.func @kernel(%arg0: i32, %arg1: memref<8x32xf32, #tpu.memory_space<vmem>>, %arg2: memref<1x32xf32, #tpu.memory_space<vmem>>, %arg3: memref<1x32xf32, #tpu.memory_space<vmem>>, %arg4: memref<32x96xbf16, #tpu.memory_space<vmem>>, %arg5: memref<1x96xf32, #tpu.memory_space<vmem>>, %arg6: memref<32x32xbf16, #tpu.memory_space<vmem>>, %arg7: memref<1x32xf32, #tpu.memory_space<vmem>>, %arg8: memref<1x32xf32, #tpu.memory_space<vmem>>, %arg9: memref<1x32xf32, #tpu.memory_space<vmem>>, %arg10: memref<32x128xbf16, #tpu.memory_space<vmem>>, %arg11: memref<1x128xf32, #tpu.memory_space<vmem>>, %arg12: memref<128x32xbf16, #tpu.memory_space<vmem>>, %arg13: memref<1x32xf32, #tpu.memory_space<vmem>>, %arg14: memref<8x32xf32, #tpu.memory_space<vmem>>) attributes {dimension_semantics = [#tpu.dimension_semantics<parallel>], iteration_bounds = array<i64: 2>, scalar_prefetch = 0 : i64, scratch_operands = 0 : i64, tpu.core_type = #tpu.core_type<tc>, window_params = [{transform_indices = @transform_0, window_bounds = array<i64: 8, 32>}, {pipeline_mode = #tpu.pipeline_mode<synchronous>, transform_indices = @transform_1, window_bounds = array<i64: 1, 32>}, {pipeline_mode = #tpu.pipeline_mode<synchronous>, transform_indices = @transform_2, window_bounds = array<i64: 1, 32>}, {pipeline_mode = #tpu.pipeline_mode<synchronous>, transform_indices = @transform_3, window_bounds = array<i64: 32, 96>}, {pipeline_mode = #tpu.pipeline_mode<synchronous>, transform_indices = @transform_4, window_bounds = array<i64: 1, 96>}, {pipeline_mode = #tpu.pipeline_mode<synchronous>, transform_indices = @transform_5, window_bounds = array<i64: 32, 32>}, {pipeline_mode = #tpu.pipeline_mode<synchronous>, transform_indices = @transform_6, window_bounds = array<i64: 1, 32>}, {pipeline_mode = #tpu.pipeline_mode<synchronous>, transform_indices = @transform_7, window_bounds = array<i64: 1, 32>}, {pipeline_mode = #tpu.pipeline_mode<synchronous>, transform_indices = @transform_8, window_bounds = array<i64: 1, 32>}, {pipeline_mode = #tpu.pipeline_mode<synchronous>, transform_indices = @transform_9, window_bounds = array<i64: 32, 128>}, {pipeline_mode = #tpu.pipeline_mode<synchronous>, transform_indices = @transform_10, window_bounds = array<i64: 1, 128>}, {pipeline_mode = #tpu.pipeline_mode<synchronous>, transform_indices = @transform_11, window_bounds = array<i64: 128, 32>}, {pipeline_mode = #tpu.pipeline_mode<synchronous>, transform_indices = @transform_12, window_bounds = array<i64: 1, 32>}, {transform_indices = @transform_13, window_bounds = array<i64: 8, 32>}]} {
    %c0 = arith.constant 0 : index
    %c0_0 = arith.constant 0 : index
    %0 = vector.load %arg1[%c0, %c0_0] : memref<8x32xf32, #tpu.memory_space<vmem>>, vector<8x32xf32>
    %cst = arith.constant dense<0.000000e+00> : vector<8xf32>
    %1 = vector.multi_reduction <add>, %0, %cst [1] : vector<8x32xf32> to vector<8xf32>
    %2 = vector.shape_cast %1 : vector<8xf32> to vector<8x1xf32>
    %cst_1 = arith.constant 3.200000e+01 : f32
    %3 = vector.broadcast %cst_1 : f32 to vector<8x1xf32>
    %4 = arith.divf %2, %3 : vector<8x1xf32>
    %5 = vector.broadcast %4 : vector<8x1xf32> to vector<8x32xf32>
    %6 = arith.subf %0, %5 : vector<8x32xf32>
    %7 = arith.mulf %6, %6 : vector<8x32xf32>
    %cst_2 = arith.constant dense<0.000000e+00> : vector<8xf32>
    %8 = vector.multi_reduction <add>, %7, %cst_2 [1] : vector<8x32xf32> to vector<8xf32>
    %9 = vector.shape_cast %8 : vector<8xf32> to vector<8x1xf32>
    %cst_3 = arith.constant 3.200000e+01 : f32
    %10 = vector.broadcast %cst_3 : f32 to vector<8x1xf32>
    %11 = arith.divf %9, %10 : vector<8x1xf32>
    %cst_4 = arith.constant 9.99999974E-6 : f32
    %12 = vector.broadcast %cst_4 : f32 to vector<8x1xf32>
    %13 = arith.addf %11, %12 : vector<8x1xf32>
    %14 = math.rsqrt %13 : vector<8x1xf32>
    %15 = vector.broadcast %14 : vector<8x1xf32> to vector<8x32xf32>
    %16 = arith.mulf %6, %15 : vector<8x32xf32>
    %c0_5 = arith.constant 0 : index
    %c0_6 = arith.constant 0 : index
    %17 = vector.load %arg2[%c0_5, %c0_6] : memref<1x32xf32, #tpu.memory_space<vmem>>, vector<1x32xf32>
    %18 = vector.broadcast %17 : vector<1x32xf32> to vector<8x32xf32>
    %19 = arith.mulf %16, %18 : vector<8x32xf32>
    %c0_7 = arith.constant 0 : index
    %c0_8 = arith.constant 0 : index
    %20 = vector.load %arg3[%c0_7, %c0_8] : memref<1x32xf32, #tpu.memory_space<vmem>>, vector<1x32xf32>
    %21 = vector.broadcast %20 : vector<1x32xf32> to vector<8x32xf32>
    %22 = arith.addf %19, %21 : vector<8x32xf32>
    %23 = arith.truncf %22 : vector<8x32xf32> to vector<8x32xbf16>
    %c0_9 = arith.constant 0 : index
    %c0_10 = arith.constant 0 : index
    %24 = vector.load %arg4[%c0_9, %c0_10] : memref<32x96xbf16, #tpu.memory_space<vmem>>, vector<32x96xbf16>
    %cst_11 = arith.constant dense<0.000000e+00> : vector<8x96xf32>
    %25 = tpu.matmul %23, %24, %cst_11 {dimension_numbers = #tpu.dot_dimension_numbers<[1], [0], [0], [1], [0, 0, 1, 1], [], []>} : vector<8x32xbf16>, vector<32x96xbf16>, vector<8x96xf32> -> vector<8x96xf32>
    %c0_12 = arith.constant 0 : index
    %c0_13 = arith.constant 0 : index
    %26 = vector.load %arg5[%c0_12, %c0_13] : memref<1x96xf32, #tpu.memory_space<vmem>>, vector<1x96xf32>
    %27 = vector.broadcast %26 : vector<1x96xf32> to vector<8x96xf32>
    %28 = arith.addf %25, %27 : vector<8x96xf32>
    %29 = vector.extract_strided_slice %28 {offsets = [0, 0], sizes = [8, 32], strides = [1, 1]} : vector<8x96xf32> to vector<8x32xf32>
    %30 = vector.extract_strided_slice %28 {offsets = [0, 32], sizes = [8, 32], strides = [1, 1]} : vector<8x96xf32> to vector<8x32xf32>
    %31 = vector.extract_strided_slice %28 {offsets = [0, 64], sizes = [8, 32], strides = [1, 1]} : vector<8x96xf32> to vector<8x32xf32>
    %32 = vector.shape_cast %29 : vector<8x32xf32> to vector<1x8x4x8xf32>
    %33 = tpu.transpose %32, [0, 2, 1, 3] : vector<1x8x4x8xf32> -> vector<1x4x8x8xf32>
    %34 = vector.shape_cast %33 : vector<1x4x8x8xf32> to vector<4x8x8xf32>
    %35 = arith.truncf %34 : vector<4x8x8xf32> to vector<4x8x8xbf16>
    %36 = vector.shape_cast %30 : vector<8x32xf32> to vector<1x8x4x8xf32>
    %37 = tpu.transpose %36, [0, 2, 1, 3] : vector<1x8x4x8xf32> -> vector<1x4x8x8xf32>
    %38 = vector.shape_cast %37 : vector<1x4x8x8xf32> to vector<4x8x8xf32>
    %39 = arith.truncf %38 : vector<4x8x8xf32> to vector<4x8x8xbf16>
    %40 = vector.shape_cast %31 : vector<8x32xf32> to vector<1x8x4x8xf32>
    %41 = tpu.transpose %40, [0, 2, 1, 3] : vector<1x8x4x8xf32> -> vector<1x4x8x8xf32>
    %42 = vector.shape_cast %41 : vector<1x4x8x8xf32> to vector<4x8x8xf32>
    %43 = arith.truncf %42 : vector<4x8x8xf32> to vector<4x8x8xbf16>
    "tpu.trace_start"() <{level = 10 : i32, message = "gqd,gkd->gqk"}> : () -> ()
    %cst_14 = arith.constant dense<0.000000e+00> : vector<4x8x8xf32>
    %44 = tpu.matmul %35, %39, %cst_14 {dimension_numbers = #tpu.dot_dimension_numbers<[2], [2], [1], [1], [0, 0, 0, 1, 1, 1], [0], [0]>} : vector<4x8x8xbf16>, vector<4x8x8xbf16>, vector<4x8x8xf32> -> vector<4x8x8xf32>
    "tpu.trace_stop"() : () -> ()
    %cst_15 = arith.constant dense<0xFF800000> : vector<4x8xf32>
    %45 = vector.multi_reduction <maximumf>, %44, %cst_15 [2] : vector<4x8x8xf32> to vector<4x8xf32>
    %46 = vector.shape_cast %45 : vector<4x8xf32> to vector<4x8x1xf32>
    %47 = vector.broadcast %46 : vector<4x8x1xf32> to vector<4x8x8xf32>
    %48 = arith.subf %44, %47 : vector<4x8x8xf32>
    %49 = math.exp %48 : vector<4x8x8xf32>
    %cst_16 = arith.constant dense<0.000000e+00> : vector<4x8xf32>
    %50 = vector.multi_reduction <add>, %49, %cst_16 [2] : vector<4x8x8xf32> to vector<4x8xf32>
    %51 = vector.shape_cast %50 : vector<4x8xf32> to vector<4x8x1xf32>
    %52 = tpu.reciprocal %51 {approx = true} : vector<4x8x1xf32> -> vector<4x8x1xf32>
    %53 = vector.broadcast %52 : vector<4x8x1xf32> to vector<4x8x8xf32>
    %54 = arith.mulf %49, %53 : vector<4x8x8xf32>
    %55 = arith.truncf %54 : vector<4x8x8xf32> to vector<4x8x8xbf16>
    "tpu.trace_start"() <{level = 10 : i32, message = "gqk,gkd->gqd"}> : () -> ()
    %cst_17 = arith.constant dense<0.000000e+00> : vector<4x8x8xf32>
    %56 = tpu.matmul %55, %43, %cst_17 {dimension_numbers = #tpu.dot_dimension_numbers<[2], [1], [1], [2], [0, 0, 0, 1, 1, 2], [0], [0]>} : vector<4x8x8xbf16>, vector<4x8x8xbf16>, vector<4x8x8xf32> -> vector<4x8x8xf32>
    "tpu.trace_stop"() : () -> ()
    %57 = vector.shape_cast %56 : vector<4x8x8xf32> to vector<1x4x8x8xf32>
    %58 = tpu.transpose %57, [0, 2, 1, 3] : vector<1x4x8x8xf32> -> vector<1x8x4x8xf32>
    %59 = vector.shape_cast %58 : vector<1x8x4x8xf32> to vector<8x32xf32>
    %60 = arith.truncf %59 : vector<8x32xf32> to vector<8x32xbf16>
    %c0_18 = arith.constant 0 : index
    %c0_19 = arith.constant 0 : index
    %61 = vector.load %arg6[%c0_18, %c0_19] : memref<32x32xbf16, #tpu.memory_space<vmem>>, vector<32x32xbf16>
    %cst_20 = arith.constant dense<0.000000e+00> : vector<8x32xf32>
    %62 = tpu.matmul %60, %61, %cst_20 {dimension_numbers = #tpu.dot_dimension_numbers<[1], [0], [0], [1], [0, 0, 1, 1], [], []>} : vector<8x32xbf16>, vector<32x32xbf16>, vector<8x32xf32> -> vector<8x32xf32>
    %c0_21 = arith.constant 0 : index
    %c0_22 = arith.constant 0 : index
    %63 = vector.load %arg7[%c0_21, %c0_22] : memref<1x32xf32, #tpu.memory_space<vmem>>, vector<1x32xf32>
    %64 = vector.broadcast %63 : vector<1x32xf32> to vector<8x32xf32>
    %65 = arith.addf %62, %64 : vector<8x32xf32>
    %66 = arith.addf %0, %65 : vector<8x32xf32>
    %cst_23 = arith.constant dense<0.000000e+00> : vector<8xf32>
    %67 = vector.multi_reduction <add>, %66, %cst_23 [1] : vector<8x32xf32> to vector<8xf32>
    %68 = vector.shape_cast %67 : vector<8xf32> to vector<8x1xf32>
    %cst_24 = arith.constant 3.200000e+01 : f32
    %69 = vector.broadcast %cst_24 : f32 to vector<8x1xf32>
    %70 = arith.divf %68, %69 : vector<8x1xf32>
    %71 = vector.broadcast %70 : vector<8x1xf32> to vector<8x32xf32>
    %72 = arith.subf %66, %71 : vector<8x32xf32>
    %73 = arith.mulf %72, %72 : vector<8x32xf32>
    %cst_25 = arith.constant dense<0.000000e+00> : vector<8xf32>
    %74 = vector.multi_reduction <add>, %73, %cst_25 [1] : vector<8x32xf32> to vector<8xf32>
    %75 = vector.shape_cast %74 : vector<8xf32> to vector<8x1xf32>
    %cst_26 = arith.constant 3.200000e+01 : f32
    %76 = vector.broadcast %cst_26 : f32 to vector<8x1xf32>
    %77 = arith.divf %75, %76 : vector<8x1xf32>
    %cst_27 = arith.constant 9.99999974E-6 : f32
    %78 = vector.broadcast %cst_27 : f32 to vector<8x1xf32>
    %79 = arith.addf %77, %78 : vector<8x1xf32>
    %80 = math.rsqrt %79 : vector<8x1xf32>
    %81 = vector.broadcast %80 : vector<8x1xf32> to vector<8x32xf32>
    %82 = arith.mulf %72, %81 : vector<8x32xf32>
    %c0_28 = arith.constant 0 : index
    %c0_29 = arith.constant 0 : index
    %83 = vector.load %arg8[%c0_28, %c0_29] : memref<1x32xf32, #tpu.memory_space<vmem>>, vector<1x32xf32>
    %84 = vector.broadcast %83 : vector<1x32xf32> to vector<8x32xf32>
    %85 = arith.mulf %82, %84 : vector<8x32xf32>
    %c0_30 = arith.constant 0 : index
    %c0_31 = arith.constant 0 : index
    %86 = vector.load %arg9[%c0_30, %c0_31] : memref<1x32xf32, #tpu.memory_space<vmem>>, vector<1x32xf32>
    %87 = vector.broadcast %86 : vector<1x32xf32> to vector<8x32xf32>
    %88 = arith.addf %85, %87 : vector<8x32xf32>
    %89 = arith.truncf %88 : vector<8x32xf32> to vector<8x32xbf16>
    %c0_32 = arith.constant 0 : index
    %c0_33 = arith.constant 0 : index
    %90 = vector.load %arg10[%c0_32, %c0_33] : memref<32x128xbf16, #tpu.memory_space<vmem>>, vector<32x128xbf16>
    %cst_34 = arith.constant dense<0.000000e+00> : vector<8x128xf32>
    %91 = tpu.matmul %89, %90, %cst_34 {dimension_numbers = #tpu.dot_dimension_numbers<[1], [0], [0], [1], [0, 0, 1, 1], [], []>} : vector<8x32xbf16>, vector<32x128xbf16>, vector<8x128xf32> -> vector<8x128xf32>
    %c0_35 = arith.constant 0 : index
    %c0_36 = arith.constant 0 : index
    %92 = vector.load %arg11[%c0_35, %c0_36] : memref<1x128xf32, #tpu.memory_space<vmem>>, vector<1x128xf32>
    %93 = vector.broadcast %92 : vector<1x128xf32> to vector<8x128xf32>
    %94 = arith.addf %91, %93 : vector<8x128xf32>
    %cst_37 = arith.constant 5.000000e-01 : f32
    %95 = vector.broadcast %cst_37 : f32 to vector<8x128xf32>
    %96 = arith.mulf %95, %94 : vector<8x128xf32>
    %cst_38 = arith.constant 4.471500e-02 : f32
    %97 = vector.broadcast %cst_38 : f32 to vector<8x128xf32>
    %98 = arith.mulf %97, %94 : vector<8x128xf32>
    %99 = arith.mulf %98, %94 : vector<8x128xf32>
    %100 = arith.mulf %99, %94 : vector<8x128xf32>
    %101 = arith.addf %94, %100 : vector<8x128xf32>
    %cst_39 = arith.constant 0.797884583 : f32
    %102 = vector.broadcast %cst_39 : f32 to vector<8x128xf32>
    %103 = arith.mulf %102, %101 : vector<8x128xf32>
    %104 = math.tanh %103 : vector<8x128xf32>
    %cst_40 = arith.constant 1.000000e+00 : f32
    %105 = vector.broadcast %cst_40 : f32 to vector<8x128xf32>
    %106 = arith.addf %105, %104 : vector<8x128xf32>
    %107 = arith.mulf %96, %106 : vector<8x128xf32>
    %108 = arith.truncf %107 : vector<8x128xf32> to vector<8x128xbf16>
    %c0_41 = arith.constant 0 : index
    %c0_42 = arith.constant 0 : index
    %109 = vector.load %arg12[%c0_41, %c0_42] : memref<128x32xbf16, #tpu.memory_space<vmem>>, vector<128x32xbf16>
    %cst_43 = arith.constant dense<0.000000e+00> : vector<8x32xf32>
    %110 = tpu.matmul %108, %109, %cst_43 {dimension_numbers = #tpu.dot_dimension_numbers<[1], [0], [0], [1], [0, 0, 1, 1], [], []>} : vector<8x128xbf16>, vector<128x32xbf16>, vector<8x32xf32> -> vector<8x32xf32>
    %c0_44 = arith.constant 0 : index
    %c0_45 = arith.constant 0 : index
    %111 = vector.load %arg13[%c0_44, %c0_45] : memref<1x32xf32, #tpu.memory_space<vmem>>, vector<1x32xf32>
    %112 = vector.broadcast %111 : vector<1x32xf32> to vector<8x32xf32>
    %113 = arith.addf %110, %112 : vector<8x32xf32>
    %114 = arith.addf %66, %113 : vector<8x32xf32>
    %c0_46 = arith.constant 0 : index
    %c0_47 = arith.constant 0 : index
    %115 = vector.load %arg14[%c0_46, %c0_47] : memref<8x32xf32, #tpu.memory_space<vmem>>, vector<8x32xf32>
    tpu.vector_store %arg14[%c0_46, %c0_47], %114 {strides = array<i32>} : memref<8x32xf32, #tpu.memory_space<vmem>>, vector<8x32xf32>,
    return
  }
  func.func @transform_0(%arg0: i32) -> (i32, i32) {
    %c0_i32 = arith.constant 0 : i32
    %c0_i32_0 = arith.constant 0 : i32
    return %arg0, %c0_i32 : i32, i32
  }
  func.func @transform_1(%arg0: i32) -> (i32, i32) {
    %c0_i32 = arith.constant 0 : i32
    %c0_i32_0 = arith.constant 0 : i32
    %c0_i32_1 = arith.constant 0 : i32
    return %c0_i32, %c0_i32_0 : i32, i32
  }
  func.func @transform_2(%arg0: i32) -> (i32, i32) {
    %c0_i32 = arith.constant 0 : i32
    %c0_i32_0 = arith.constant 0 : i32
    %c0_i32_1 = arith.constant 0 : i32
    return %c0_i32, %c0_i32_0 : i32, i32
  }
  func.func @transform_3(%arg0: i32) -> (i32, i32) {
    %c0_i32 = arith.constant 0 : i32
    %c0_i32_0 = arith.constant 0 : i32
    %c0_i32_1 = arith.constant 0 : i32
    return %c0_i32, %c0_i32_0 : i32, i32
  }
  func.func @transform_4(%arg0: i32) -> (i32, i32) {
    %c0_i32 = arith.constant 0 : i32
    %c0_i32_0 = arith.constant 0 : i32
    %c0_i32_1 = arith.constant 0 : i32
    return %c0_i32, %c0_i32_0 : i32, i32
  }
  func.func @transform_5(%arg0: i32) -> (i32, i32) {
    %c0_i32 = arith.constant 0 : i32
    %c0_i32_0 = arith.constant 0 : i32
    %c0_i32_1 = arith.constant 0 : i32
    return %c0_i32, %c0_i32_0 : i32, i32
  }
  func.func @transform_6(%arg0: i32) -> (i32, i32) {
    %c0_i32 = arith.constant 0 : i32
    %c0_i32_0 = arith.constant 0 : i32
    %c0_i32_1 = arith.constant 0 : i32
    return %c0_i32, %c0_i32_0 : i32, i32
  }
  func.func @transform_7(%arg0: i32) -> (i32, i32) {
    %c0_i32 = arith.constant 0 : i32
    %c0_i32_0 = arith.constant 0 : i32
    %c0_i32_1 = arith.constant 0 : i32
    return %c0_i32, %c0_i32_0 : i32, i32
  }
  func.func @transform_8(%arg0: i32) -> (i32, i32) {
    %c0_i32 = arith.constant 0 : i32
    %c0_i32_0 = arith.constant 0 : i32
    %c0_i32_1 = arith.constant 0 : i32
    return %c0_i32, %c0_i32_0 : i32, i32
  }
  func.func @transform_9(%arg0: i32) -> (i32, i32) {
    %c0_i32 = arith.constant 0 : i32
    %c0_i32_0 = arith.constant 0 : i32
    %c0_i32_1 = arith.constant 0 : i32
    return %c0_i32, %c0_i32_0 : i32, i32
  }
  func.func @transform_10(%arg0: i32) -> (i32, i32) {
    %c0_i32 = arith.constant 0 : i32
    %c0_i32_0 = arith.constant 0 : i32
    %c0_i32_1 = arith.constant 0 : i32
    return %c0_i32, %c0_i32_0 : i32, i32
  }
  func.func @transform_11(%arg0: i32) -> (i32, i32) {
    %c0_i32 = arith.constant 0 : i32
    %c0_i32_0 = arith.constant 0 : i32
    %c0_i32_1 = arith.constant 0 : i32
    return %c0_i32, %c0_i32_0 : i32, i32
  }
  func.func @transform_12(%arg0: i32) -> (i32, i32) {
    %c0_i32 = arith.constant 0 : i32
    %c0_i32_0 = arith.constant 0 : i32
    %c0_i32_1 = arith.constant 0 : i32
    return %c0_i32, %c0_i32_0 : i32, i32
  }
  func.func @transform_13(%arg0: i32) -> (i32, i32) {
    %c0_i32 = arith.constant 0 : i32
    %c0_i32_0 = arith.constant 0 : i32
    return %arg0, %c0_i32 : i32, i32
  }
}

</mosaic_0001>

<bundles_post_ra>
// kernel: tpu_custom_call.1
= control target key start
LH: loop header
LB: loop body
LE: loop exit
PB: predicated region body
PF: predicated region fallthrough
CT: control target
= control target key end

     0   :  { %s2222_s0 = inlined_call_operand.vmem [shape: f32[16,32], index: 0, kind: input, shape index: {}]   ;;  %s2223_s1 = inlined_call_operand.vmem [shape: f32[1,32], index: 1, kind: input, shape index: {}]   ;;  %s2224_s2 = inlined_call_operand.vmem [shape: f32[1,32], index: 2, kind: input, shape index: {}]   ;;  %s2225_s3 = inlined_call_operand.vmem [shape: bf16[32,96], index: 3, kind: input, shape index: {}]   ;;  %s2226_s4 = inlined_call_operand.vmem [shape: f32[1,96], index: 4, kind: input, shape index: {}]   ;;  %s2227_s5 = inlined_call_operand.vmem [shape: bf16[32,32], index: 5, kind: input, shape index: {}]   ;;  %s2228_s6 = inlined_call_operand.vmem [shape: f32[1,32], index: 6, kind: input, shape index: {}]   ;;  %s2229_s7 = inlined_call_operand.vmem [shape: f32[1,32], index: 7, kind: input, shape index: {}]   ;;  %s2230_s8 = inlined_call_operand.vmem [shape: f32[1,32], index: 8, kind: input, shape index: {}]   ;;  %s2231_s9 = inlined_call_operand.vmem [shape: bf16[32,128], index: 9, kind: input, shape index: {}]   ;;  %s2232_s10 = inlined_call_operand.vmem [shape: f32[1,128], index: 10, kind: input, shape index: {}]   ;;  %s2233_s11 = inlined_call_operand.vmem [shape: bf16[128,32], index: 11, kind: input, shape index: {}]   ;;  %s2234_s12 = inlined_call_operand.vmem [shape: f32[1,32], index: 12, kind: input, shape index: {}]   ;;  %s2235_s13 = inlined_call_operand.hbm [shape: f32[16,32], index: 13, kind: output, shape index: {}]  }
   0x1   :  { %2236 = sst [smem:[#allocation5_spill]] %s2222_s0 }
   0x2   :  { %2237 = sst [smem:[#allocation6_spill]] %s2223_s1 }
   0x3   :  { %2238 = sst [smem:[#allocation7_spill]] %s2224_s2 }
   0x4   :  { %2239 = sst [smem:[#allocation8_spill]] %s2225_s3 }
   0x5   :  { %18 = vsyncpa [#allocation3], 0 }
   0x6   :  { %20 = vsyncpa [#allocation3 + $0x1], 0  ;;  %s1834_s25 = smov 0   ;;  %s1836_s26 = smov 0  }
   0x7   :  { %s1838_s27 = smov 0   ;;  %s1840_s28 = smov 0  }
   0x8 LB: > { %s1855_s29 = sadd.s32 4294967295, %s1751_s28   ;;  %s1496_s30 = sadd.s32 4294967294, %s1751_s28   ;;  %s1751_s28 = sphi %s1840_s28, %s2249_s28   ;;  %s1747_s27 = sphi %s1838_s27, %s2248_s27   ;;  %s1743_s26 = sphi %s1836_s26, %s2247_s26   ;;  %s1739_s25 = sphi %s1834_s25, %s2246_s25  }
   0x9   : > { %s1859_s14 = sadd.s32 1, %s1751_s28   ;;  %s311_s15 = sadd.s32 1, %s1747_s27 }
   0xa   : > { %s308_s16 = ssub.s32 %s1751_s28, %s1859_s14  ;;  %p321_p0 = scmp.ne.s32.totalorder %s1747_s27, %s1743_s26 }
   0xb   : > { %p309_p1 = scmp.eq.s32.totalorder %s308_s16, 0  ;;  %p322_p2 = scmp.eq.s32.totalorder %s1855_s29, 1 }
   0xc   : > { %p327_p3 = scmp.ne.s32.totalorder %s1743_s26, %s1739_s25  ;;  %p328_p4 = scmp.eq.s32.totalorder %s1496_s30, 1 }
   0xd   : > { %s1870_s17 = scalar_select %p309_p1, %s1747_s27, %s311_s15  }
   0xe   : > { %p1872_p5 = por %p322_p2, %p321_p0  ;;  %p1876_p6 = por %p328_p4, %p327_p3 }
   0xf   : > { %p1499_p7 = scmp.ge.s32.totalorder %s1751_s28, 1  ;;  %p389_p8 = scmp.lt.s32.totalorder %s1751_s28, 3 }
  0x11   : > { %p390_p9 = pnand %p1499_p7, %p389_p8 }
  0x12   : > { %p432_p10 = scmp.lt.s32.totalorder (!%p390_p9), %s1855_s29, 1  ;;  %s2242_s0 = sld [smem:[#allocation5_spill]] (!%p390_p9) }
  0x13   : > { %393 = sbr.rel (%p390_p9) target bundleno = 2078 (0x81e), region = 72  ;;  %s2243_s3 = sld [smem:[#allocation8_spill]] (!%p390_p9) }
  0x14   : > { %s2244_s1 = sld [smem:[#allocation6_spill]] (!%p390_p9)  ;;  %s1754_s16 = smov (!%p390_p9), 104  }
  0x15   : > { %s2245_s2 = sld [smem:[#allocation7_spill]] (!%p390_p9)  ;;  %s1757_s22 = smov (!%p390_p9), 96  }
  0x16   : > { %s1760_s23 = smov (!%p390_p9), 64   ;;  %s1762_s30 = smov (!%p390_p9), 16  }
  0x17   : > { %s1763_s15 = smov (!%p390_p9), 24  }
  0x18   : > { %s433_s20 = scalar_select %p432_p10, %s1855_s29, 1  ;;  %vm438_vm0 = vcmask 261120   ;;  %v1753_v2 = vmov 32.0   ;;  %v1659_v32 = vld [vmem:[%s2226_s4] ss:$0 sm:$0xff]  ;;  %vm526_vm5 = vcmask 1047556  }
  0x19   : > { %1665 = vrcp.f32 %v1753_v2  ;;  %v1574_v14 = vld [vmem:[%s2243_s3 + $0x8] sm:$0xff]  ;;  %v1573_v15 = vld [vmem:[%s2243_s3] sm:$0xff]  ;;  %v1758_v42 = vmov 1983009808   ;;  %v1759_v56 = vmov 1934713408  }
  0x1a   : > { %s1501_s21 = sshll.u32 %s433_s20, 3  ;;  %508 = vmatpush.bf16.msra.mxu0 %v1574_v14  ;;  %v1657_v25 = vld [vmem:[%s2244_s1] ss:$0 sm:$0xff]  ;;  %s1755_s20 = smov 120   ;;  %v531_v43 = vunpack.c.l.s4 %v1758_v42  ;;  %v555_v57 = vunpack.c.l.s4 %v1759_v56  ;;  %vm892_vm6 = vcmask 64512   ;;  %vm1020_vm7 = vcmask 1043456  }
  0x1b   : > { %s435_s24 = scalar_lea.vmem %s2242_s0, %s1501_s21  ;;  %v1658_v28 = vld [vmem:[%s2245_s2] ss:$0 sm:$0xff]  ;;  %s1756_s21 = smov 112   ;;  %vm1217_vm8 = vcmask 130048   ;;  %vm1219_vm9 = vcmask 195584  }
  0x1c   : > { %v1887_v0 = vld [vmem:[%s435_s24] sm:$0xff]  ;;  %v1921_v47 = vunpack.c.0.s8 %v531_v43  ;;  %v1931_v62 = vunpack.c.0.s8 %v555_v57  ;;  %s1761_s24 = smov 8   ;;  %s429_s0 = sand.u32 1, %s1743_s26  }
  0x1d   : > { %v439_v1 = vsel %vm438_vm0, %v1887_v0, 0.0  ;;  %s1500_s1 = sshll.u32 %s429_s0, 3 }
  0x1e   : > { %440 = vadd.xlane.f32.xlu0 %v439_v1  ;;  %509 = vmatpush.bf16.msra.mxu0 %v1573_v15 }
  0x1f   : > { %v1666_v3 = vpop.eup %1665 }
  0x20   : > { %v443_v4 = vmul.f32 32.0, %v1666_v3  ;;  %vm447_vm1 = vweird.f32 %v1666_v3 }
  0x22   : > { %v444_v5 = vsub.f32 1.0, %v443_v4 }
  0x24   : > { %v445_v6 = vmul.f32 %v1666_v3, %v444_v5 }
  0x26   : > { %v446_v7 = vadd.f32 %v1666_v3, %v445_v6 }
  0x28   : > { %v1891_v8 = vsel %vm447_vm1, %v1666_v3, %v446_v7 }
  0x91   : > { %v441_v9 = vpop.xlane.xlu0 %440 }
  0x92   : > { %v449_v10 = vmul.f32 %v1891_v8, %v441_v9 }
  0x94   : > { %v450_v11 = vsub.f32 %v1887_v0, %v449_v10 }
  0x96   : > { %v451_v12 = vmul.f32 %v450_v11, %v450_v11 }
  0x98   : > { %v452_v13 = vsel %vm438_vm0, %v451_v12, 0.0 }
  0x99   : > { %453 = vadd.xlane.f32.xlu0 %v452_v13 }
 0x10c   : > { %v454_v16 = vpop.xlane.xlu0 %453 }
 0x10d   : > { %v455_v17 = vmul.f32 %v454_v16, %v1891_v8 }
 0x10f   : > { %v456_v18 = vadd.f32 1e-05, %v455_v17 }
 0x111   : > { %1667 = vrsqrt.f32 %v456_v18  ;;  %vm463_vm3 = vweird.f32 %v456_v18 }
 0x117   : > { %v1668_v19 = vpop.eup %1667 }
 0x118   : > { %v458_v20 = vmul.f32 %v1668_v19, %v456_v18  ;;  %vm464_vm2 = vweird.f32 %v1668_v19 }
 0x119   : > { %vm465_vm4 = vmor %vm463_vm3, %vm464_vm2 }
 0x11a   : > { %v459_v21 = vmul.f32 %v1668_v19, %v458_v20 }
 0x11c   : > { %v460_v22 = vmul.f32 0.5, %v459_v21 }
 0x11e   : > { %v461_v23 = vsub.f32 1.5, %v460_v22 }
 0x120   : > { %v462_v24 = vmul.f32 %v1668_v19, %v461_v23 }
 0x122   : > { %v466_v26 = vsel %vm465_vm4, %v1668_v19, %v462_v24 }
 0x123   : > { %v467_v27 = vmul.f32 %v466_v26, %v450_v11 }
 0x125   : > { %v472_v29 = vmul.f32 %v1657_v25, %v467_v27 }
 0x127   : > { %v477_v30 = vadd.f32 %v1658_v28, %v472_v29 }
 0x129   : > { %v478_v31 = vpack.c.bf16 %v477_v30, %v477_v30 }
 0x12b   : > { %1510 = vmatmul.msk.bf16.vlgmr.msra.gmra.mxu0 %vm438_vm0, %v478_v31 }
 0x1a8   : > { %v511_v33 = vpop.f32.mrf.mxu0 }
 0x1a9   : > { %v512_v34 = vadd.f32 %v1659_v32, %v511_v33 }
 0x1ab   : > { %522 = vrot.lane.b32.xlu2 %v512_v34, %s1754_s16  ;;  %516 = vrot.lane.b32.xlu1 %v512_v34, %s1755_s20  ;;  %v528_v44 = vrot.slane %v512_v34, 4 }
 0x1b0   : > { %v513_v35 = vpop.f32.mrf.mxu0 }
 0x1b3   : > { %519 = vrot.lane.b32.xlu1 %v512_v34, %s1756_s21 }
 0x205   : > { %v523_v38 = vpop.permute.xlu2 %522 }
 0x206   : > { %v538_v51 = vrot.slane %v523_v38, 4 }
 0x21d   : > { %v517_v36 = vpop.permute.xlu1 %516 }
 0x21e   : > { %v1913_v37 = vpack.i.bf16 %v517_v36, %v512_v34  ;;  %v540_v48 = vrot.slane %v517_v36, 4  ;;  %v539_v52 = vsel %vm526_vm5, %v538_v51, %v517_v36 }
 0x21f   : > { %v545_v58 = vperm.slane %v539_v52, %v1921_v47 }
 0x220   : > { %1638 = vrot.lane.b32.xlu2 %v1913_v37, %s1757_s22  ;;  %v541_v53 = vsel %vm526_vm5, %v523_v38, %v540_v48 }
 0x221   : > { %v549_v59 = vperm.slane %v541_v53, %v1921_v47  ;;  %v550_v63 = vrot.slane %v545_v58, 4 }
 0x223   : > { %v562_v1 = vrot.slane %v549_v59, 4 }
 0x225   : > { %v520_v39 = vpop.permute.xlu1 %519 }
 0x226   : > { %v1916_v40 = vpack.i.bf16 %v523_v38, %v520_v39  ;;  %v525_v41 = vrot.slane %v520_v39, 4  ;;  %v529_v46 = vsel %vm526_vm5, %v520_v39, %v528_v44 }
 0x227   : > { %v537_v50 = vperm.slane %v529_v46, %v1921_v47 }
 0x228   : > { %1643 = vrot.lane.b32.xlu0 %v1916_v40, %s1757_s22  ;;  %v527_v45 = vsel %vm526_vm5, %v525_v41, %v512_v34 }
 0x229   : > { %v533_v49 = vperm.slane %v527_v45, %v1921_v47  ;;  %v564_v55 = vrot.slane %v537_v50, 4  ;;  %v563_v6 = vsel %vm526_vm5, %v562_v1, %v537_v50 }
 0x22a   : > { %v569_v11 = vperm.slane %v563_v6, %v1931_v62 }
 0x22b   : > { %v552_v54 = vrot.slane %v533_v49, 4  ;;  %v565_v61 = vsel %vm526_vm5, %v549_v59, %v564_v55  ;;  %v551_v5 = vsel %vm526_vm5, %v550_v63, %v533_v49 }
 0x22c   : > { %v573_v3 = vperm.slane %v565_v61, %v1931_v62  ;;  %v557_v10 = vperm.slane %v551_v5, %v1931_v62  ;;  %v578_v20 = vrot.slane %v569_v11, 4 }
 0x22d   : > { %v553_v60 = vsel %vm526_vm5, %v545_v58, %v552_v54 }
 0x22e   : > { %v561_v2 = vperm.slane %v553_v60, %v1931_v62  ;;  %v580_v13 = vrot.slane %v573_v3, 4  ;;  %v574_v19 = vrot.slane %v557_v10, 4  ;;  %v579_v39 = vsel %vm526_vm5, 0.0, %v578_v20 }
 0x230   : > { %v576_v12 = vrot.slane %v561_v2, 4  ;;  %v581_v21 = vsel %vm526_vm5, 0.0, %v580_v13  ;;  %v593_v27 = vsel %vm526_vm5, %v580_v13, %v569_v11  ;;  %v575_v41 = vsel %vm526_vm5, 0.0, %v574_v19 }
 0x231   : > { %v598_v30 = vrot.slane %v581_v21, 4  ;;  %v597_v48 = vperm.slane %v593_v27, %v1921_v47 }
 0x232   : > { %v577_v22 = vsel %vm526_vm5, 0.0, %v576_v12  ;;  %v582_v42 = vsel %vm526_vm5, %v576_v12, %v557_v10 }
 0x233   : > { %v587_v33 = vrot.slane %v577_v22, 4  ;;  %v599_v51 = vsel %vm526_vm5, %v598_v30, %v579_v39  ;;  %v586_v54 = vperm.slane %v582_v42, %v1921_v47  ;;  %v618_v2 = vrot.slane %v597_v48, 4 }
 0x234   : > { %v603_v60 = vperm.slane %v599_v51, %v1921_v47 }
 0x235   : > { %v588_v55 = vsel %vm526_vm5, %v587_v33, %v575_v41  ;;  %v606_v6 = vrot.slane %v586_v54, 4 }
 0x236   : > { %v592_v5 = vperm.slane %v588_v55, %v1921_v47  ;;  %v619_v22 = vsel %vm526_vm5, %v603_v60, %v618_v2 }
 0x238   : > { %v607_v21 = vsel %vm526_vm5, %v592_v5, %v606_v6 }
 0x27a   : > { %v1639_v4 = vpop.permute.xlu2 %1638 }
 0x27b   : > { %v1641_v7 = vunpack.i.h.bf16 %v1639_v4  ;;  %v1640_v9 = vunpack.i.l.bf16 %v1639_v4 }
 0x27d   : > { %v666_v15 = vrot.slane %v1641_v7, 4  ;;  %v654_v16 = vrot.slane %v1640_v9, 4 }
 0x29a   : > { %v1644_v14 = vpop.permute.xlu0 %1643 }
 0x29b   : > { %v1646_v17 = vunpack.i.h.bf16 %v1644_v14  ;;  %v1645_v18 = vunpack.i.l.bf16 %v1644_v14 }
 0x29d   : > { %v664_v23 = vrot.slane %v1646_v17, 4  ;;  %v667_v24 = vsel %vm526_vm5, %v1646_v17, %v666_v15  ;;  %v652_v25 = vrot.slane %v1645_v18, 4  ;;  %v655_v26 = vsel %vm526_vm5, %v1645_v18, %v654_v16 }
 0x29e   : > { %v675_v28 = vperm.slane %v667_v24, %v1921_v47  ;;  %v663_v29 = vperm.slane %v655_v26, %v1921_v47  ;;  %v616_v15 = vrot.slane %v603_v60, 4  ;;  %v604_v26 = vrot.slane %v592_v5, 4 }
 0x29f   : > { %v665_v31 = vsel %vm526_vm5, %v664_v23, %v1641_v7  ;;  %v653_v32 = vsel %vm526_vm5, %v652_v25, %v1640_v9 }
 0x2a0   : > { %v671_v34 = vperm.slane %v665_v31, %v1921_v47  ;;  %v688_v35 = vrot.slane %v675_v28, 4  ;;  %v659_v36 = vperm.slane %v653_v32, %v1921_v47  ;;  %v690_v38 = vrot.slane %v663_v29, 4 }
 0x2a1   : > { %v627_v32 = vperm.slane %v619_v22, %v1931_v62  ;;  %v605_v39 = vsel %vm526_vm5, %v604_v26, %v586_v54 }
 0x2a2   : > { %v676_v43 = vrot.slane %v671_v34, 4  ;;  %v678_v44 = vrot.slane %v659_v36, 4  ;;  %v689_v45 = vsel %vm526_vm5, %v688_v35, %v663_v29  ;;  %v691_v46 = vsel %vm526_vm5, %v675_v28, %v690_v38 }
 0x2a3   : > { %v695_v49 = vperm.slane %v689_v45, %v1931_v62  ;;  %v699_v50 = vperm.slane %v691_v46, %v1931_v62  ;;  %v617_v28 = vsel %vm526_vm5, %v616_v15, %v597_v48  ;;  %v632_v48 = vrot.slane %v627_v32, 4 }
 0x2a4   : > { %v677_v52 = vsel %vm526_vm5, %v676_v43, %v659_v36  ;;  %v679_v53 = vsel %vm526_vm5, %v671_v34, %v678_v44  ;;  %v615_v36 = vperm.slane %v607_v21, %v1931_v62  ;;  %v623_v41 = vperm.slane %v617_v28, %v1931_v62 }
 0x2a5   : > { %v683_v56 = vperm.slane %v677_v52, %v1931_v62  ;;  %v687_v57 = vperm.slane %v679_v53, %v1931_v62  ;;  %v704_v58 = vrot.slane %v695_v49, 4  ;;  %v706_v59 = vrot.slane %v699_v50, 4 }
 0x2a6   : > { %v611_v52 = vperm.slane %v605_v39, %v1931_v62 }
 0x2a7   : > { %v700_v61 = vrot.slane %v683_v56, 4  ;;  %v702_v63 = vrot.slane %v687_v57, 4  ;;  %v707_v1 = vsel %vm526_vm5, 0.0, %v706_v59  ;;  %v719_v4 = vsel %vm526_vm5, %v706_v59, %v695_v49 }
 0x2a8   : > { %v724_v3 = vrot.slane %v707_v1, 4  ;;  %v705_v9 = vsel %vm526_vm5, 0.0, %v704_v58  ;;  %v723_v11 = vperm.slane %v719_v4, %v1921_v47  ;;  %v634_v57 = vrot.slane %v615_v36, 4 }
 0x2a9   : > { %v703_v7 = vsel %vm526_vm5, 0.0, %v702_v63  ;;  %v708_v10 = vsel %vm526_vm5, %v702_v63, %v683_v56  ;;  %v701_v16 = vsel %vm526_vm5, 0.0, %v700_v61  ;;  %v628_v58 = vrot.slane %v623_v41, 4 }
 0x2aa   : > { %v712_v12 = vperm.slane %v708_v10, %v1921_v47  ;;  %v713_v13 = vrot.slane %v703_v7, 4  ;;  %v725_v14 = vsel %vm526_vm5, %v724_v3, %v705_v9  ;;  %v744_v18 = vrot.slane %v723_v11, 4 }
 0x2ab   : > { %v729_v17 = vperm.slane %v725_v14, %v1921_v47  ;;  %v633_v63 = vsel %vm526_vm5, %v632_v48, %v615_v36  ;;  %v630_v1 = vrot.slane %v611_v52, 4  ;;  %v629_v3 = vsel %vm526_vm5, %v628_v58, %v611_v52 }
 0x2ac   : > { %v714_v19 = vsel %vm526_vm5, %v713_v13, %v701_v16  ;;  %v732_v20 = vrot.slane %v712_v12, 4  ;;  %v635_v4 = vsel %vm526_vm5, %v627_v32, %v634_v57  ;;  %v638_v5 = vpack.c.bf16 %v633_v63, %v633_v63 }
 0x2ad   : > { %v718_v23 = vperm.slane %v714_v19, %v1921_v47  ;;  %v745_v24 = vsel %vm526_vm5, %v729_v17, %v744_v18  ;;  %v742_v25 = vrot.slane %v729_v17, 4  ;;  %v631_v6 = vsel %vm526_vm5, %v623_v41, %v630_v1 }
 0x2ae   : > { %v753_v27 = vperm.slane %v745_v24, %v1931_v62  ;;  %v636_v7 = vpack.c.bf16 %v629_v3, %v629_v3  ;;  %v639_v9 = vpack.c.bf16 %v635_v4, %v635_v4  ;;  %v637_v10 = vpack.c.bf16 %v631_v6, %v631_v6 }
 0x2af   : > { %v733_v29 = vsel %vm526_vm5, %v718_v23, %v732_v20  ;;  %v730_v30 = vrot.slane %v718_v23, 4  ;;  %v743_v31 = vsel %vm526_vm5, %v742_v25, %v723_v11 }
 0x2b0   : > { %v741_v33 = vperm.slane %v733_v29, %v1931_v62  ;;  %v758_v34 = vrot.slane %v753_v27, 4  ;;  %v749_v35 = vperm.slane %v743_v31, %v1931_v62 }
 0x2b1   : > { %v731_v38 = vsel %vm526_vm5, %v730_v30, %v712_v12 }
 0x2b2   : > { %v759_v42 = vsel %vm526_vm5, %v758_v34, %v741_v33  ;;  %v737_v43 = vperm.slane %v731_v38, %v1931_v62  ;;  %v754_v44 = vrot.slane %v749_v35, 4  ;;  %v760_v45 = vrot.slane %v741_v33, 4 }
 0x2b3   : > { %v764_v46 = vpack.c.bf16 %v759_v42, %v759_v42 }
 0x2b4   : > { %v755_v49 = vsel %vm526_vm5, %v754_v44, %v737_v43  ;;  %v761_v50 = vsel %vm526_vm5, %v753_v27, %v760_v45  ;;  %v756_v51 = vrot.slane %v737_v43, 4 }
 0x2b5   : > { %v935_v53 = vsel %vm892_vm6, %v764_v46, 0  ;;  %v762_v54 = vpack.c.bf16 %v755_v49, %v755_v49  ;;  %v765_v55 = vpack.c.bf16 %v761_v50, %v761_v50 }
 0x2b6   : > { %944 = vmatpush.bf16.xpose.msra.mxu3 %v935_v53  ;;  %v757_v56 = vsel %vm526_vm5, %v749_v35, %v756_v51 }
 0x2b7   : > { %v897_v59 = vsel %vm892_vm6, %v762_v54, 0  ;;  %v954_v60 = vsel %vm892_vm6, %v765_v55, 0  ;;  %v763_v61 = vpack.c.bf16 %v757_v56, %v757_v56 }
 0x2b8   : > { %906 = vmatpush.bf16.xpose.msra.mxu1 %v897_v59  ;;  %963 = vmatpush.bf16.xpose.msrb.mxu0 %v954_v60 }
 0x2b9   : > { %v916_v2 = vsel %vm892_vm6, %v763_v61, 0 }
 0x2ba   : > { %925 = vmatpush.bf16.xpose.msra.mxu2 %v916_v2 }
 0x2bd   : > { %1513 = vmatmul.msk.bf16.vlgmr.msra.gmra.mxu3 %vm892_vm6, %v638_v5 }
 0x2bf   : > { %1511 = vmatmul.msk.bf16.vlgmr.msra.gmra.mxu1 %vm892_vm6, %v636_v7  ;;  %1514 = vmatmul.msk.bf16.vlgmr.msrb.gmra.mxu0 %vm892_vm6, %v639_v9 }
 0x2c1   : > { %1512 = vmatmul.msk.bf16.vlgmr.msra.gmra.mxu2 %vm892_vm6, %v637_v10 }
 0x33c   : > { %v908_v11 = vpop.f32.mrf.mxu1  ;;  %v965_v12 = vpop.f32.mrf.mxu0 }
 0x33d   : > { %v978_v13 = vsel %vm892_vm6, %v965_v12, -inf  ;;  %v969_v14 = vsel %vm892_vm6, %v908_v11, -inf }
 0x33e   : > { %979 = vmax.xlane.f32.xlu2 %v978_v13  ;;  %970 = vmax.xlane.f32.xlu0 %v969_v14 }
 0x340   : > { %v946_v15 = vpop.f32.mrf.mxu3 }
 0x341   : > { %v975_v16 = vsel %vm892_vm6, %v946_v15, -inf }
 0x342   : > { %976 = vmax.xlane.f32.xlu1 %v975_v16 }
 0x344   : > { %v910_v17 = vpop.f32.mrf.mxu1  ;;  %v927_v18 = vpop.f32.mrf.mxu2 }
 0x345   : > { %v967_v19 = vpop.f32.mrf.mxu0  ;;  %v972_v20 = vsel %vm892_vm6, %v927_v18, -inf }
 0x346   : > { %973 = vmax.xlane.f32.xlu2 %v972_v20 }
 0x348   : > { %v948_v21 = vpop.f32.mrf.mxu3 }
 0x34c   : > { %v929_v22 = vpop.f32.mrf.mxu2 }
 0x35b   : > { %1648 = vrot.lane.b32.xlu1 %v1913_v37, %s1760_s23 }
 0x35e   : > { %1653 = vrot.lane.b32.xlu2 %v1916_v40, %s1760_s23  ;;  %s431_s23 = scalar_lea.vmem [#allocation2], %s1500_s1  ;;  %s1709_s1 = scalar_lea.hbm %s2235_s13, 16 }
 0x3b1   : > { %v980_v23 = vpop.xlane.xlu2 %979  ;;  %v971_v26 = vpop.xlane.xlu0 %970 }
 0x3b2   : > { %v984_v24 = vsub.f32 %v965_v12, %v980_v23  ;;  %v981_v29 = vsub.f32 %v908_v11, %v971_v26 }
 0x3b4   : > { %v991_v25 = vmul.f32 1.442695, %v984_v24  ;;  %v985_v34 = vmul.f32 1.442695, %v981_v29 }
 0x3b5   : > { %v977_v27 = vpop.xlane.xlu1 %976 }
 0x3b6   : > { %1669 = vpow2.f32 %v991_v25  ;;  %v983_v28 = vsub.f32 %v946_v15, %v977_v27 }
 0x3b8   : > { %v989_v30 = vmul.f32 1.442695, %v983_v28 }
 0x3b9   : > { %v974_v31 = vpop.xlane.xlu2 %973 }
 0x3ba   : > { %1671 = vpow2.f32 %v989_v30  ;;  %v982_v32 = vsub.f32 %v927_v18, %v974_v31 }
 0x3bc   : > { %v2017_v33 = vpop.eup %1669  ;;  %v987_v35 = vmul.f32 1.442695, %v982_v32 }
 0x3bd   : > { %v1002_v37 = vsel %vm892_vm6, %v2017_v33, 0.0 }
 0x3be   : > { %1673 = vpow2.f32 %v987_v35  ;;  %1003 = vadd.xlane.f32.xlu2 %v1002_v37 }
 0x3bf   : > { %1675 = vpow2.f32 %v985_v34 }
 0x3c0   : > { %v2021_v40 = vpop.eup %1671 }
 0x3c1   : > { %v999_v36 = vsel %vm892_vm6, %v2021_v40, 0.0  ;;  %v1654_v42 = vpop.permute.xlu2 %1653 }
 0x3c2   : > { %1000 = vadd.xlane.f32.xlu0 %v999_v36  ;;  %v1656_v44 = vunpack.i.h.bf16 %v1654_v42  ;;  %v1655_v45 = vunpack.i.l.bf16 %v1654_v42 }
 0x3c4   : > { %v2025_v38 = vpop.eup %1673  ;;  %v790_v48 = vrot.slane %v1656_v44, 4  ;;  %v778_v49 = vrot.slane %v1655_v45, 4 }
 0x3c5   : > { %v996_v39 = vsel %vm892_vm6, %v2025_v38, 0.0  ;;  %v2029_v41 = vpop.eup %1675 }
 0x3c6   : > { %997 = vadd.xlane.f32.xlu1 %v996_v39  ;;  %v993_v43 = vsel %vm892_vm6, %v2029_v41, 0.0 }
 0x3ca   : > { %994 = vadd.xlane.f32.xlu0 %v993_v43 }
 0x3cd   : > { %v1649_v46 = vpop.permute.xlu1 %1648 }
 0x3ce   : > { %v1651_v50 = vunpack.i.h.bf16 %v1649_v46  ;;  %v1650_v51 = vunpack.i.l.bf16 %v1649_v46 }
 0x3d0   : > { %v792_v52 = vrot.slane %v1651_v50, 4  ;;  %v779_v53 = vsel %vm526_vm5, %v778_v49, %v1650_v51  ;;  %v780_v54 = vrot.slane %v1650_v51, 4  ;;  %v791_v55 = vsel %vm526_vm5, %v790_v48, %v1651_v50 }
 0x3d1   : > { %v785_v56 = vperm.slane %v779_v53, %v1921_v47  ;;  %v797_v57 = vperm.slane %v791_v55, %v1921_v47 }
 0x3d2   : > { %v781_v58 = vsel %vm526_vm5, %v1655_v45, %v780_v54  ;;  %v793_v59 = vsel %vm526_vm5, %v1656_v44, %v792_v52 }
 0x3d3   : > { %v789_v60 = vperm.slane %v781_v58, %v1921_v47  ;;  %v801_v61 = vperm.slane %v793_v59, %v1921_v47  ;;  %v802_v63 = vrot.slane %v797_v57, 4  ;;  %v804_v1 = vrot.slane %v785_v56, 4 }
 0x3d5   : > { %v803_v2 = vsel %vm526_vm5, %v802_v63, %v785_v56  ;;  %v805_v3 = vsel %vm526_vm5, %v797_v57, %v804_v1  ;;  %v814_v4 = vrot.slane %v801_v61, 4  ;;  %v816_v5 = vrot.slane %v789_v60, 4 }
 0x3d6   : > { %v809_v6 = vperm.slane %v803_v2, %v1931_v62  ;;  %v813_v7 = vperm.slane %v805_v3, %v1931_v62 }
 0x3d7   : > { %v815_v9 = vsel %vm526_vm5, %v814_v4, %v789_v60  ;;  %v817_v10 = vsel %vm526_vm5, %v801_v61, %v816_v5 }
 0x3d8   : > { %v821_v11 = vperm.slane %v815_v9, %v1931_v62  ;;  %v825_v12 = vperm.slane %v817_v10, %v1931_v62  ;;  %v826_v13 = vrot.slane %v809_v6, 4  ;;  %v828_v14 = vrot.slane %v813_v7, 4 }
 0x3da   : > { %v829_v15 = vsel %vm526_vm5, 0.0, %v828_v14  ;;  %v830_v16 = vrot.slane %v821_v11, 4  ;;  %v832_v17 = vrot.slane %v825_v12, 4  ;;  %v834_v18 = vsel %vm526_vm5, %v828_v14, %v809_v6 }
 0x3db   : > { %v839_v19 = vrot.slane %v829_v15, 4  ;;  %v827_v20 = vsel %vm526_vm5, 0.0, %v826_v13  ;;  %v838_v22 = vperm.slane %v834_v18, %v1921_v47 }
 0x3dc   : > { %v833_v21 = vsel %vm526_vm5, 0.0, %v832_v17  ;;  %v845_v23 = vsel %vm526_vm5, %v832_v17, %v821_v11  ;;  %v831_v27 = vsel %vm526_vm5, 0.0, %v830_v16 }
 0x3dd   : > { %v850_v24 = vrot.slane %v833_v21, 4  ;;  %v840_v25 = vsel %vm526_vm5, %v839_v19, %v827_v20  ;;  %v849_v26 = vperm.slane %v845_v23, %v1921_v47  ;;  %v858_v29 = vrot.slane %v838_v22, 4 }
 0x3de   : > { %v844_v28 = vperm.slane %v840_v25, %v1921_v47 }
 0x3df   : > { %v851_v30 = vsel %vm526_vm5, %v850_v24, %v831_v27  ;;  %v870_v31 = vrot.slane %v849_v26, 4 }
 0x3e0   : > { %v855_v32 = vperm.slane %v851_v30, %v1921_v47  ;;  %v859_v34 = vsel %vm526_vm5, %v844_v28, %v858_v29  ;;  %v856_v35 = vrot.slane %v844_v28, 4 }
 0x3e1   : > { %v867_v37 = vperm.slane %v859_v34, %v1931_v62 }
 0x3e2   : > { %v871_v36 = vsel %vm526_vm5, %v855_v32, %v870_v31  ;;  %v857_v39 = vsel %vm526_vm5, %v856_v35, %v838_v22  ;;  %v868_v42 = vrot.slane %v855_v32, 4 }
 0x3e3   : > { %v879_v43 = vperm.slane %v871_v36, %v1931_v62  ;;  %v886_v44 = vrot.slane %v867_v37, 4  ;;  %v863_v45 = vperm.slane %v857_v39, %v1931_v62 }
 0x3e4   : > { %v869_v46 = vsel %vm526_vm5, %v868_v42, %v849_v26 }
 0x3e5   : > { %v887_v48 = vsel %vm526_vm5, %v879_v43, %v886_v44  ;;  %v875_v49 = vperm.slane %v869_v46, %v1931_v62  ;;  %v882_v50 = vrot.slane %v863_v45, 4  ;;  %v884_v51 = vrot.slane %v879_v43, 4 }
 0x3e6   : > { %v891_v52 = vpack.c.bf16 %v887_v48, %v887_v48 }
 0x3e7   : > { %v883_v53 = vsel %vm526_vm5, %v875_v49, %v882_v50  ;;  %v885_v54 = vsel %vm526_vm5, %v884_v51, %v867_v37  ;;  %v880_v55 = vrot.slane %v875_v49, 4 }
 0x3e8   : > { %v1079_v56 = vsel %vm1020_vm7, %v891_v52, 0  ;;  %v889_v57 = vpack.c.bf16 %v883_v53, %v883_v53  ;;  %v890_v58 = vpack.c.bf16 %v885_v54, %v885_v54 }
 0x3e9   : > { %1088 = vmatpush.bf16.msra.mxu0 %v1079_v56  ;;  %v881_v59 = vsel %vm526_vm5, %v880_v55, %v863_v45 }
 0x3ea   : > { %v1041_v60 = vsel %vm1020_vm7, %v889_v57, 0  ;;  %v1060_v61 = vsel %vm1020_vm7, %v890_v58, 0  ;;  %v888_v63 = vpack.c.bf16 %v881_v59, %v881_v59 }
 0x3eb   : > { %1050 = vmatpush.bf16.msrb.mxu2 %v1041_v60  ;;  %1069 = vmatpush.bf16.msrb.mxu3 %v1060_v61 }
 0x3ec   : > { %v1022_v1 = vsel %vm1020_vm7, %v888_v63, 0 }
 0x3ed   : > { %1031 = vmatpush.bf16.msrb.mxu1 %v1022_v1 }
 0x431   : > { %v1004_v2 = vpop.xlane.xlu2 %1003 }
 0x432   : > { %1677 = vrcp.f32 %v1004_v2 }
 0x435   : > { %v1001_v3 = vpop.xlane.xlu0 %1000 }
 0x436   : > { %1679 = vrcp.f32 %v1001_v3 }
 0x438   : > { %v1678_v4 = vpop.eup %1677 }
 0x439   : > { %v1012_v5 = vmul.f32 %v1678_v4, %v2017_v33  ;;  %v998_v6 = vpop.xlane.xlu1 %997 }
 0x43a   : > { %1681 = vrcp.f32 %v998_v6 }
 0x43b   : > { %v1016_v7 = vpack.c.bf16 %v1012_v5, %v1012_v5 }
 0x43c   : > { %v1680_v9 = vpop.eup %1679 }
 0x43d   : > { %v1011_v10 = vmul.f32 %v1680_v9, %v2021_v40  ;;  %1518 = vmatmul.msk.bf16.vlgmr.msra.gmra.mxu0 %vm892_vm6, %v1016_v7  ;;  %v995_v11 = vpop.xlane.xlu0 %994 }
 0x43e   : > { %1683 = vrcp.f32 %v995_v11 }
 0x43f   : > { %v1015_v12 = vpack.c.bf16 %v1011_v10, %v1011_v10 }
 0x440   : > { %v1682_v13 = vpop.eup %1681 }
 0x441   : > { %v1010_v14 = vmul.f32 %v1682_v13, %v2025_v38  ;;  %1517 = vmatmul.msk.bf16.vlgmr.msrb.gmra.mxu3 %vm892_vm6, %v1015_v12 }
 0x443   : > { %v1014_v15 = vpack.c.bf16 %v1010_v14, %v1010_v14 }
 0x444   : > { %v1684_v16 = vpop.eup %1683 }
 0x445   : > { %v1009_v33 = vmul.f32 %v1684_v16, %v2029_v41  ;;  %1516 = vmatmul.msk.bf16.vlgmr.msrb.gmra.mxu2 %vm892_vm6, %v1014_v15 }
 0x447   : > { %v1013_v17 = vpack.c.bf16 %v1009_v33, %v1009_v33 }
 0x449   : > { %1515 = vmatmul.msk.bf16.vlgmr.msrb.gmra.mxu1 %vm892_vm6, %v1013_v17 }
 0x4ba   : > { %v1090_v40 = vpop.f32.mrf.mxu0 }
 0x4bb   : > { %v1106_v22 = vrot.slane %v1090_v40, 4 }
 0x4c2   : > { %v1092_v18 = vpop.f32.mrf.mxu0 }
 0x4c4   : > { %v1071_v19 = vpop.f32.mrf.mxu3 }
 0x4c5   : > { %v1094_v20 = vrot.slane %v1071_v19, 4 }
 0x4c6   : > { %v1033_v21 = vpop.f32.mrf.mxu1 }
 0x4c7   : > { %v1095_v23 = vsel %vm526_vm5, %v1094_v20, %v1033_v21  ;;  %v1096_v38 = vrot.slane %v1033_v21, 4 }
 0x4c8   : > { %v1101_v24 = vperm.slane %v1095_v23, %v1921_v47  ;;  %v1052_v25 = vpop.f32.mrf.mxu2 }
 0x4c9   : > { %v1097_v26 = vsel %vm526_vm5, %v1071_v19, %v1096_v38  ;;  %v1107_v41 = vsel %vm526_vm5, %v1106_v22, %v1052_v25  ;;  %v1108_v27 = vrot.slane %v1052_v25, 4  ;;  %v1576_v25 = vld [vmem:[%s2227_s5 + $0x8] sm:$0xff] }
 0x4ca   : > { %v1105_v28 = vperm.slane %v1097_v26, %v1921_v47  ;;  %v1120_v29 = vrot.slane %v1101_v24, 4  ;;  %v1113_v30 = vperm.slane %v1107_v41, %v1921_v47  ;;  %1251 = vmatpush.bf16.msra.mxu1 %v1576_v25  ;;  %v1575_v26 = vld [vmem:[%s2227_s5] sm:$0xff] }
 0x4cb   : > { %v1109_v31 = vsel %vm526_vm5, %v1090_v40, %v1108_v27 }
 0x4cc   : > { %v1132_v32 = vrot.slane %v1105_v28, 4  ;;  %v1117_v34 = vperm.slane %v1109_v31, %v1921_v47  ;;  %v1118_v35 = vrot.slane %v1113_v30, 4  ;;  %v1121_v37 = vsel %vm526_vm5, %v1113_v30, %v1120_v29  ;;  %v1073_v36 = vpop.f32.mrf.mxu3 }
 0x4cd   : > { %v1129_v39 = vperm.slane %v1121_v37, %v1931_v62 }
 0x4ce   : > { %v1119_v42 = vsel %vm526_vm5, %v1118_v35, %v1101_v24  ;;  %v1130_v43 = vrot.slane %v1117_v34, 4  ;;  %v1133_v44 = vsel %vm526_vm5, %v1117_v34, %v1132_v32  ;;  %v1035_v45 = vpop.f32.mrf.mxu1  ;;  %1252 = vmatpush.bf16.msra.mxu1 %v1575_v26  ;;  %v1660_v32 = vld [vmem:[%s2228_s6] ss:$0 sm:$0xff] }
 0x4cf   : > { %v1125_v46 = vperm.slane %v1119_v42, %v1931_v62  ;;  %v1141_v48 = vperm.slane %v1133_v44, %v1931_v62  ;;  %v1144_v49 = vrot.slane %v1129_v39, 4 }
 0x4d0   : > { %v1131_v50 = vsel %vm526_vm5, %v1130_v43, %v1105_v28  ;;  %v1054_v51 = vpop.f32.mrf.mxu2 }
 0x4d1   : > { %v1137_v52 = vperm.slane %v1131_v50, %v1931_v62  ;;  %v1142_v53 = vrot.slane %v1125_v46, 4  ;;  %v1145_v54 = vsel %vm526_vm5, 0.0, %v1144_v49  ;;  %v1148_v55 = vrot.slane %v1141_v48, 4  ;;  %v1578_v48 = vld [vmem:[%s2231_s9 + $0x8] sm:$0xff] }
 0x4d2   : > { %v1155_v56 = vrot.slane %v1145_v54, 4  ;;  %v1150_v60 = vsel %vm526_vm5, %v1144_v49, %v1125_v46  ;;  %1321 = vmatpush.bf16.msra.mxu2 %v1578_v48  ;;  %v1586_v49 = vld [vmem:[%s2233_s11 + $0x38] sm:$0xff] }
 0x4d3   : > { %v1143_v57 = vsel %vm526_vm5, 0.0, %v1142_v53  ;;  %v1146_v58 = vrot.slane %v1137_v52, 4  ;;  %v1149_v59 = vsel %vm526_vm5, 0.0, %v1148_v55  ;;  %v1161_v1 = vsel %vm526_vm5, %v1148_v55, %v1137_v52  ;;  %1406 = vmatpush.bf16.msra.mxu3 %v1586_v49  ;;  %v1585_v52 = vld [vmem:[%s2233_s11 + $0x30] sm:$0xff] }
 0x4d4   : > { %v1156_v61 = vsel %vm526_vm5, %v1155_v56, %v1143_v57  ;;  %v1166_v63 = vrot.slane %v1149_v59, 4  ;;  %v1165_v4 = vperm.slane %v1161_v1, %v1921_v47  ;;  %v1154_v6 = vperm.slane %v1150_v60, %v1921_v47 }
 0x4d5   : > { %v1147_v2 = vsel %vm526_vm5, 0.0, %v1146_v58  ;;  %v1160_v3 = vperm.slane %v1156_v61, %v1921_v47 }
 0x4d6   : > { %v1167_v5 = vsel %vm526_vm5, %v1166_v63, %v1147_v2  ;;  %v1186_v10 = vrot.slane %v1165_v4, 4  ;;  %v1174_v17 = vrot.slane %v1154_v6, 4  ;;  %v1662_v63 = vld [vmem:[%s2230_s8] ss:$0 sm:$0xff] }
 0x4d7   : > { %v1171_v7 = vperm.slane %v1167_v5, %v1921_v47  ;;  %v1172_v9 = vrot.slane %v1160_v3, 4  ;;  %1407 = vmatpush.bf16.msra.mxu3 %v1585_v52  ;;  %v1583_v5 = vld [vmem:[%s2233_s11 + $0x20] sm:$0xff] }
 0x4d8   : > { %v1175_v20 = vsel %vm526_vm5, %v1160_v3, %v1174_v17 }
 0x4d9   : > { %v1173_v11 = vsel %vm526_vm5, %v1172_v9, %v1154_v6  ;;  %v1184_v12 = vrot.slane %v1171_v7, 4  ;;  %v1187_v15 = vsel %vm526_vm5, %v1171_v7, %v1186_v10  ;;  %v1183_v22 = vperm.slane %v1175_v20, %v1931_v62  ;;  %v1582_v6 = vld [vmem:[%s2233_s11 + $0x18] sm:$0xff]  ;;  %v1581_v7 = vld [vmem:[%s2233_s11 + $0x10] sm:$0xff]  ;;  %v1580_v9 = vld [vmem:[%s2233_s11 + $0x8] sm:$0xff] }
 0x4da   : > { %v1179_v13 = vperm.slane %v1173_v11, %v1931_v62  ;;  %v1195_v47 = vperm.slane %v1187_v15, %v1931_v62  ;;  %v1579_v10 = vld [vmem:[%s2233_s11] sm:$0xff] }
 0x4db   : > { %v1185_v14 = vsel %vm526_vm5, %v1184_v12, %v1165_v4  ;;  %v1202_v38 = vrot.slane %v1183_v22, 4  ;;  %v1584_v4 = vld [vmem:[%s2233_s11 + $0x28] sm:$0xff]  ;;  %v1663_v11 = vld [vmem:[%s2232_s10] ss:$0 sm:$0xff] }
 0x4dc   : > { %v1191_v16 = vperm.slane %v1185_v14, %v1931_v62  ;;  %v1198_v33 = vrot.slane %v1179_v13, 4  ;;  %v1200_v21 = vrot.slane %v1195_v47, 4  ;;  %1408 = vmatpush.bf16.msra.mxu3 %v1584_v4 }
 0x4dd   : > { %v1203_v24 = vsel %vm526_vm5, %v1195_v47, %v1202_v38 }
 0x4de   : > { %v1196_v40 = vrot.slane %v1191_v16, 4  ;;  %v1199_v18 = vsel %vm526_vm5, %v1191_v16, %v1198_v33  ;;  %v1201_v23 = vsel %vm526_vm5, %v1200_v21, %v1183_v22  ;;  %v1664_v22 = vld [vmem:[%s2234_s12] ss:$0 sm:$0xff] }
 0x4df   : > { %1205 = vrot.lane.b32.xlu0 %v1199_v18, %s1761_s24  ;;  %s1434_s24 = sshll.u32 %s431_s23, 4  ;;  %s1435_s24 = int_to_ptr.vmem [resolvable:$true] %s1434_s24 }
 0x4e0   : > { %v1197_v19 = vsel %vm526_vm5, %v1196_v40, %v1179_v13  ;;  %1409 = vmatpush.bf16.msra.mxu3 %v1583_v5 }
 0x4e4   : > { %1410 = vmatpush.bf16.msra.mxu3 %v1582_v6 }
 0x4e7   : > { %1209 = vrot.lane.b32.xlu0 %v1201_v23, %s1762_s30  ;;  %s1570_s30 = sshll.u32 %s1855_s29, 3  ;;  %s1422_s29 = scalar_lea.sflag [#allocation3], %s429_s0 }
 0x4e8   : > { %1411 = vmatpush.bf16.msra.mxu3 %v1581_v7  ;;  %s1432_s22 = scalar_lea.hbm %s2235_s13, %s1570_s30 }
 0x4e9   : > { %s1436_s2 = sshll.u32 %s1432_s22, 4  ;;  %s1437_s2 = int_to_ptr.hbm [resolvable:$true] %s1436_s2 }
 0x4ea   : > { %s1703_s3 = sshra.s32 %s1437_s2, 4  ;;  %s1704_s3 = int_to_ptr.hbm [resolvable:$true] %s1703_s3 }
 0x4eb   : > { %p1710_p0 = scmp.lt.s32.totalorder %s1704_s3, %s2235_s13 }
 0x4ec   : > { %1412 = vmatpush.bf16.msra.mxu3 %v1580_v9 }
 0x4ef   : > { %1213 = vrot.lane.b32.xlu0 %v1203_v24, %s1763_s15  ;;  %s1705_s15 = scalar_lea.hbm %s1704_s3, 8 }
 0x4f0   : > { %1413 = vmatpush.bf16.msra.mxu3 %v1579_v10  ;;  %p1706_p11 = scmp.ne.s32.totalorder %s1704_s3, %s1705_s15  ;;  %p1711_p1 = scmp.lt.s32.totalorder %s1709_s1, %s1705_s15 }
 0x4f2   : > { %p1707_p12 = pnand %p1706_p11, %p1872_p5  ;;  %p1712_p2 = por %p1711_p1, %p1710_p0 }
 0x4f4   : > { %p1708_p13 = pneg %p1707_p12 }
 0x4f6   : > { %p1713_p3 = pnand %p1712_p2, %p1708_p13 }
 0x551   : > { %v1206_v62 = vpop.permute.xlu0 %1205 }
 0x552   : > { %v1216_v27 = vsel %vm892_vm6, %v1197_v19, %v1206_v62 }
 0x559   : > { %v1210_v41 = vpop.permute.xlu0 %1209 }
 0x55a   : > { %v1218_v28 = vsel %vm1217_vm8, %v1216_v27, %v1210_v41 }
 0x561   : > { %v1214_v29 = vpop.permute.xlu0 %1213 }
 0x562   : > { %v1220_v30 = vsel %vm1219_vm9, %v1218_v28, %v1214_v29 }
 0x563   : > { %v1221_v31 = vpack.c.bf16 %v1220_v30, %v1220_v30 }
 0x565   : > { %1527 = vmatmul.msk.bf16.vlgmr.msra.gmra.mxu1 %vm438_vm0, %v1221_v31 }
 0x5e2   : > { %v1254_v34 = vpop.f32.mrf.mxu1 }
 0x5e3   : > { %v1255_v35 = vadd.f32 %v1660_v32, %v1254_v34 }
 0x5e5   : > { %v2137_v37 = vadd.f32 %v1255_v35, %v1887_v0  ;;  %v1577_v0 = vld [vmem:[%s2231_s9] sm:$0xff] }
 0x5e6   : > { %1322 = vmatpush.bf16.msra.mxu2 %v1577_v0 }
 0x5e7   : > { %v1259_v36 = vsel %vm438_vm0, %v2137_v37, 0.0 }
 0x5e8   : > { %1260 = vadd.xlane.f32.xlu1 %v1259_v36 }
 0x5ea   : > { %v1256_v39 = vpop.f32.mrf.mxu1 }
 0x65b   : > { %v1261_v42 = vpop.xlane.xlu1 %1260 }
 0x65c   : > { %v1262_v43 = vmul.f32 %v1261_v42, %v1891_v8 }
 0x65e   : > { %v1263_v44 = vsub.f32 %v2137_v37, %v1262_v43 }
 0x660   : > { %v1264_v45 = vmul.f32 %v1263_v44, %v1263_v44 }
 0x662   : > { %v1265_v46 = vsel %vm438_vm0, %v1264_v45, 0.0 }
 0x663   : > { %1266 = vadd.xlane.f32.xlu0 %v1265_v46 }
 0x6d6   : > { %v1267_v50 = vpop.xlane.xlu0 %1266 }
 0x6d7   : > { %v1268_v51 = vmul.f32 %v1267_v50, %v1891_v8  ;;  %v1661_v8 = vld [vmem:[%s2229_s7] ss:$0 sm:$0xff] }
 0x6d9   : > { %v1269_v53 = vadd.f32 1e-05, %v1268_v51 }
 0x6db   : > { %1685 = vrsqrt.f32 %v1269_v53  ;;  %vm1276_vm11 = vweird.f32 %v1269_v53 }
 0x6e1   : > { %v1686_v54 = vpop.eup %1685 }
 0x6e2   : > { %v1271_v55 = vmul.f32 %v1686_v54, %v1269_v53  ;;  %vm1277_vm10 = vweird.f32 %v1686_v54 }
 0x6e3   : > { %vm1278_vm12 = vmor %vm1276_vm11, %vm1277_vm10 }
 0x6e4   : > { %v1272_v56 = vmul.f32 %v1686_v54, %v1271_v55 }
 0x6e6   : > { %v1273_v57 = vmul.f32 0.5, %v1272_v56 }
 0x6e8   : > { %v1274_v58 = vsub.f32 1.5, %v1273_v57 }
 0x6ea   : > { %v1275_v59 = vmul.f32 %v1686_v54, %v1274_v58 }
 0x6ec   : > { %v1279_v60 = vsel %vm1278_vm12, %v1686_v54, %v1275_v59 }
 0x6ed   : > { %v1280_v61 = vmul.f32 %v1279_v60, %v1263_v44 }
 0x6ef   : > { %v1285_v1 = vmul.f32 %v1661_v8, %v1280_v61 }
 0x6f1   : > { %v1290_v2 = vadd.f32 %v1662_v63, %v1285_v1 }
 0x6f3   : > { %v1291_v3 = vpack.c.bf16 %v1290_v2, %v1290_v2 }
 0x6f5   : > { %1536 = vmatmul.msk.bf16.vlgmr.msra.gmra.mxu2 %vm438_vm0, %v1291_v3 }
 0x778   : > { %v1324_v12 = vpop.f32.mrf.mxu2 }
 0x779   : > { %v1325_v13 = vadd.f32 %v1663_v11, %v1324_v12 }
 0x77b   : > { %v1329_v14 = vmul.f32 0.044715, %v1325_v13  ;;  %v1328_v47 = vmul.f32 0.5, %v1325_v13 }
 0x77d   : > { %v1330_v15 = vmul.f32 %v1329_v14, %v1325_v13 }
 0x77f   : > { %v1331_v16 = vmul.f32 %v1330_v15, %v1325_v13 }
 0x780   : > { %v1326_v33 = vpop.f32.mrf.mxu2 }
 0x781   : > { %v1332_v17 = vadd.f32 %v1331_v16, %v1325_v13 }
 0x783   : > { %v1333_v40 = vmul.f32 0.7978846, %v1332_v17 }
 0x785   : > { %1687 = vtanh.f32 %v1333_v40 }
 0x78b   : > { %v1688_v18 = vpop.eup %1687 }
 0x78c   : > { %v1335_v19 = vadd.f32 1.0, %v1688_v18 }
 0x78e   : > { %v1336_v20 = vmul.f32 %v1335_v19, %v1328_v47 }
 0x790   : > { %v1337_v21 = vpack.c.bf16 %v1336_v20, %v1336_v20 }
 0x792   : > { %1414 = vmatmul.bf16.vlgmr.msra.gmra.mxu3 %v1337_v21 }
 0x815   : > { %v1415_v23 = vpop.f32.mrf.mxu3 }
 0x816   : > { %v1416_v38 = vadd.f32 %v1664_v22, %v1415_v23 }
 0x818   : > { %v1419_v24 = vadd.f32 %v1416_v38, %v2137_v37 }
 0x81a   : > { %1420 = vst.msk [vmem:[%s431_s23] sm:$0xff] %vm438_vm0, %v1419_v24 }
 0x81b   : > { %1716 = shalt.err (!%p1713_p3)
}
 0x81c   : > { %1587 = dma.vmem_to_hbm [thread:$0]  (%p1872_p5), %s1435_s24, 128, %s1437_s2, %s1422_s29  }
 0x81d   : > { %v1417_v25 = vpop.f32.mrf.mxu3 }
 0x81e PF: > { %p1593_p4 = scmp.ge.s32.totalorder %s1751_s28, 2  ;;  %s1448_s0 = sand.u32 1, %s1739_s25  }
 0x81f   : > { %s1449_s22 = scalar_lea.sflag [#allocation3], %s1448_s0 }
 0x820   : > { %p1590_p7 = pnand %p1593_p4, %p1876_p6 }
 0x822   : > { %p1591_p8 = pneg %p1590_p7 }
 0x824   : > { %1734 = dma.done.wait (%p1591_p8), %s1449_s22, 128  }
 0x825   : > { %1736 = vsyncadd (%p1591_p8), %s1449_s22, 4294967168  ;;  %p23_p9 = scmp.ge.s32.totalorder %s1859_s14, 4   ;;  %s2246_s25 = smov %s1743_s26 }
 0x826   : > { %s2247_s26 = smov %s1747_s27  ;;  %s2248_s27 = smov %s1870_s17 }
 0x827   : > { %s2249_s28 = smov %s1859_s14  ;;  %25 = sbr.rel (!%p23_p9) target bundleno = 8 (0x8), region = 107 }
 0x82c   :  { %1455 = vsyncpa [#allocation3], 1 }
 0x82d   :  { %1457 = vsyncpa [#allocation3 + $0x1], 1 }

</bundles_post_ra>
